<compile_context>
chip_gen: v7x
topology: tpu7x:2x2x1
jax: 0.10.0
libtpu: 0.0.40
codegen_flags: <defaults>
</compile_context>

<pallas_src>
import functools
import math

import jax
import jax.numpy as jnp
from jax.experimental import pallas as pl
from jax.experimental.pallas import tpu as pltpu

_EPS = 1e-5
_BLOCK_F32_BYTES = 4 * 1024 * 1024      # per-I/O-block budget (f32-equivalent)
_VMEM_LIMIT = 48 * 1024 * 1024          # fits v7x's 64 MiB physical VMEM
_MAX_PACK_LANES = 512                   # cap on L = lcm(C, 128)


def _round_up(v, m):
    return ((v + m - 1) // m) * m


def _split_bf16(x_f32):
    """Split x ~= hi + lo with both halves exactly representable in bf16."""
    hi = x_f32.astype(jnp.bfloat16)
    lo = (x_f32 - hi.astype(jnp.float32)).astype(jnp.bfloat16)
    return hi, lo


def _ln_packed_kernel(x_ref, w_ref, b_ref, g_ref, o_ref, *, inv_c, eps, in_is_bf16):
    # x_ref : (tile_rows, L)  -- G = L // C logical rows packed along lanes.
    # w_ref/b_ref : (1, L) f32 -- weight / bias tiled G times along lanes.
    # g_ref : (L, L) bf16     -- block-diagonal 0/1 "sum + broadcast" matrix.
    #
    # Ragged last grid block: only trailing *sublanes* (rows) of the block are
    # padding.  The matmuls contract over lanes only and g_ref never mixes
    # lanes of different packed rows, so padded rows cannot contaminate valid
    # rows, and their garbage results are dropped on the OOB store.  (Do NOT
    # extend this reduction across sublanes without revisiting that.)
    g = g_ref[...]
    x = x_ref[...].astype(jnp.float32)

    # First moment.  MXU pass count is controlled explicitly via a bf16 hi/lo
    # split of the f32 operand (g is 0/1-exact), instead of relying on the
    # default f32 dot precision: 2 bf16 passes, mean accurate to ~2^-18 rel.
    if in_is_bf16:
        # bf16 inputs are exactly representable -> the lo half is identically 0.
        s1 = jnp.dot(x.astype(jnp.bfloat16), g, preferred_element_type=jnp.float32)
    else:
        x_hi, x_lo = _split_bf16(x)
        s1 = (jnp.dot(x_hi, g, preferred_element_type=jnp.float32)
              + jnp.dot(x_lo, g, preferred_element_type=jnp.float32))
    mu = s1 * inv_c

    # Centered second moment (no E[x^2] - mu^2 cancellation).
    d = x - mu
    d2 = d * d
    d2_hi, d2_lo = _split_bf16(d2)
    s2 = (jnp.dot(d2_hi, g, preferred_element_type=jnp.float32)
          + jnp.dot(d2_lo, g, preferred_element_type=jnp.float32))
    var = s2 * inv_c

    inv = jax.lax.rsqrt(var + eps)           # EUP rsqrt, its own VLIW slot
    y = d * inv * w_ref[...] + b_ref[...]
    o_ref[...] = y.astype(o_ref.dtype)


def _ln_rows_kernel(x_ref, w_ref, b_ref, o_ref, *, inv_c, eps):
    # Generic fallback: x_ref (tile_rows, C); exact f32 reduction over the lane
    # axis (VPU/XLU, no MXU).  Used when C is already a multiple of 128
    # (lane-dense as-is) or the shape is not packable.
    x = x_ref[...].astype(jnp.float32)
    mu = jnp.sum(x, axis=-1, keepdims=True) * inv_c
    d = x - mu
    var = jnp.sum(d * d, axis=-1, keepdims=True) * inv_c
    inv = jax.lax.rsqrt(var + eps)
    y = d * inv * w_ref[...] + b_ref[...]
    o_ref[...] = y.astype(o_ref.dtype)


def _pick_tile_rows(n_rows, lane_width):
    # Byte-driven block size (~4 MiB f32-equivalent; f32 intermediates dominate
    # VMEM even for bf16 I/O).  Lane width is padded to 128 because VMEM pads
    # lanes, so the fallback path with C < 128 is budgeted correctly too.
    lane_pad = _round_up(lane_width, 128)
    by_bytes = max(16, _BLOCK_F32_BYTES // (4 * lane_pad))
    # Keep >= 4 grid steps when rows permit (>= 2 per TensorCore on v7x) so the
    # per-core double-buffer pipeline does not degenerate to a single step.
    by_steps = max(16, pl.cdiv(n_rows, 4))
    return _round_up(min(by_bytes, by_steps), 16)


def _run(kernel, x2, extra_inputs, extra_specs, tile_rows, lane_width):
    n_rows = x2.shape[0]
    grid = (pl.cdiv(n_rows, tile_rows),)     # ragged last block handled by Pallas
    return pl.pallas_call(
        kernel,
        out_shape=jax.ShapeDtypeStruct(x2.shape, x2.dtype),
        grid_spec=pltpu.PrefetchScalarGridSpec(
            num_scalar_prefetch=0,
            grid=grid,
            in_specs=[pl.BlockSpec((tile_rows, lane_width), lambda i: (i, 0))]
            + extra_specs,
            out_specs=pl.BlockSpec((tile_rows, lane_width), lambda i: (i, 0)),
        ),
        compiler_params=pltpu.CompilerParams(
            dimension_semantics=("parallel",),
            vmem_limit_bytes=_VMEM_LIMIT,
        ),
    )(x2, *extra_inputs)


def withbias_layernorm(x, weight, bias, *, eps=_EPS):
    """LayerNorm over the last axis; x: (..., C), weight/bias: (C,)."""
    orig_shape = x.shape
    C = int(orig_shape[-1])
    x2 = x.reshape(-1, C)
    rows = x2.shape[0]
    weight = weight.reshape(-1).astype(jnp.float32)
    bias = bias.reshape(-1).astype(jnp.float32)

    L = (C * 128) // math.gcd(C, 128)        # lcm(C, 128): lane-dense pack width
    G = L // C                               # logical rows per packed row
    packable = (G >= 2) and (L <= _MAX_PACK_LANES) and (rows % G == 0)
    # TODO(synk): when rows % G != 0, route only the < G remainder rows through
    # the fallback kernel (aliased tail write) instead of falling back entirely.

    if packable:
        xp = x2.reshape(rows // G, L)        # free row-major reshape
        wv = jnp.tile(weight, G).reshape(1, L)
        bv = jnp.tile(bias, G).reshape(1, L)
        grp = jnp.arange(L) // C
        gmat = (grp[:, None] == grp[None, :]).astype(jnp.bfloat16)   # 0/1 exact
        tile_rows = _pick_tile_rows(xp.shape[0], L)
        kern = functools.partial(
            _ln_packed_kernel, inv_c=1.0 / C, eps=eps,
            in_is_bf16=(x.dtype == jnp.bfloat16))
        extra_specs = [
            pl.BlockSpec((1, L), lambda i: (0, 0)),
            pl.BlockSpec((1, L), lambda i: (0, 0)),
            pl.BlockSpec((L, L), lambda i: (0, 0)),
        ]
        out = _run(kern, xp, (wv, bv, gmat), extra_specs, tile_rows, L)
        return out.reshape(orig_shape)

    # Generic fallback (C a multiple of 128 -> already lane-dense, or shapes
    # the packed path cannot express).
    wv = weight.reshape(1, C)
    bv = bias.reshape(1, C)
    tile_rows = _pick_tile_rows(rows, C)
    kern = functools.partial(_ln_rows_kernel, inv_c=1.0 / C, eps=eps)
    extra_specs = [
        pl.BlockSpec((1, C), lambda i: (0, 0)),
        pl.BlockSpec((1, C), lambda i: (0, 0)),
    ]
    out = _run(kern, x2, (wv, bv), extra_specs, tile_rows, C)
    return out.reshape(orig_shape)


if __name__ == "__main__":
    key = jax.random.PRNGKey(0)

    def ref_ln(x, w, b, eps=_EPS):
        xf = x.astype(jnp.float32)
        mu = jnp.mean(xf, axis=-1, keepdims=True)
        var = jnp.mean((xf - mu) ** 2, axis=-1, keepdims=True)
        return (xf - mu) / jnp.sqrt(var + eps) * w + b

    def check(shape, subkey, dtype=jnp.float32, atol=5e-5, rtol=5e-5):
        C = shape[-1]
        kx, kw, kb = jax.random.split(subkey, 3)
        x = jax.random.normal(kx, shape, dtype=jnp.float32).astype(dtype)
        # non-trivial affine params to exercise the full forward path
        w = 1.0 + 0.1 * jax.random.normal(kw, (C,), dtype=jnp.float32)
        b = 0.1 * jax.random.normal(kb, (C,), dtype=jnp.float32)
        out = jax.block_until_ready(withbias_layernorm(x, w, b))
        assert out.shape == x.shape and out.dtype == x.dtype
        ref = ref_ln(x, w, b)
        err = float(jnp.max(jnp.abs(out.astype(jnp.float32) - ref)))
        tol = atol + rtol * float(jnp.max(jnp.abs(ref)))
        assert err <= tol, (shape, str(dtype), err, tol)

    keys = jax.random.split(key, 5)
    # lane-packed path, C=32 (G=4), 4 even grid steps
    check((2, 16, 16, 32), keys[0])
    # lane-packed path, C=64 (G=2), ragged last row tile
    check((2, 10, 10, 64), keys[1])
    # extended lane-packed path, C=48 -> L=lcm(48,128)=384, G=8
    check((2, 16, 12, 48), keys[2])
    # generic fallback path (C=80: lcm(80,128)=640 > cap), ragged last tile
    check((2, 7, 9, 80), keys[3])
    # bf16 I/O on the packed path (halves HBM bytes; f32 moments in-kernel)
    check((2, 16, 16, 32), keys[4], dtype=jnp.bfloat16, atol=3e-2, rtol=3e-2)

    print("KERNEL_OK")
</pallas_src>

<mosaic_0001>
module attributes {stable_mosaic.version = 11 : i64} {
  func.func @_ln_packed_kernel(%arg0: i32, %arg1: memref<32x128xf32, #tpu.memory_space<vmem>>, %arg2: memref<1x128xf32, #tpu.memory_space<vmem>>, %arg3: memref<1x128xf32, #tpu.memory_space<vmem>>, %arg4: memref<128x128xbf16, #tpu.memory_space<vmem>>, %arg5: memref<32x128xf32, #tpu.memory_space<vmem>>) attributes {dimension_semantics = [#tpu.dimension_semantics<parallel>], iteration_bounds = array<i64: 4>, scalar_prefetch = 0 : i64, scratch_operands = 0 : i64, tpu.core_type = #tpu.core_type<tc>, window_params = [{transform_indices = @transform_0, window_bounds = array<i64: 32, 128>}, {pipeline_mode = #tpu.pipeline_mode<synchronous>, transform_indices = @transform_1, window_bounds = array<i64: 1, 128>}, {pipeline_mode = #tpu.pipeline_mode<synchronous>, transform_indices = @transform_2, window_bounds = array<i64: 1, 128>}, {pipeline_mode = #tpu.pipeline_mode<synchronous>, transform_indices = @transform_3, window_bounds = array<i64: 128, 128>}, {transform_indices = @transform_4, window_bounds = array<i64: 32, 128>}]} {
    %c0 = arith.constant 0 : index
    %c0_0 = arith.constant 0 : index
    %0 = vector.load %arg4[%c0, %c0_0] : memref<128x128xbf16, #tpu.memory_space<vmem>>, vector<128x128xbf16>
    %c0_1 = arith.constant 0 : index
    %c0_2 = arith.constant 0 : index
    %1 = vector.load %arg1[%c0_1, %c0_2] : memref<32x128xf32, #tpu.memory_space<vmem>>, vector<32x128xf32>
    %2 = arith.truncf %1 : vector<32x128xf32> to vector<32x128xbf16>
    %3 = arith.extf %2 : vector<32x128xbf16> to vector<32x128xf32>
    %4 = arith.subf %1, %3 : vector<32x128xf32>
    %5 = arith.truncf %4 : vector<32x128xf32> to vector<32x128xbf16>
    %cst = arith.constant dense<0.000000e+00> : vector<32x128xf32>
    %6 = tpu.matmul %2, %0, %cst {dimension_numbers = #tpu.dot_dimension_numbers<[1], [0], [0], [1], [0, 0, 1, 1], [], []>} : vector<32x128xbf16>, vector<128x128xbf16>, vector<32x128xf32> -> vector<32x128xf32>
    %cst_3 = arith.constant dense<0.000000e+00> : vector<32x128xf32>
    %7 = tpu.matmul %5, %0, %cst_3 {dimension_numbers = #tpu.dot_dimension_numbers<[1], [0], [0], [1], [0, 0, 1, 1], [], []>} : vector<32x128xbf16>, vector<128x128xbf16>, vector<32x128xf32> -> vector<32x128xf32>
    %8 = arith.addf %6, %7 : vector<32x128xf32>
    %cst_4 = arith.constant 3.125000e-02 : f32
    %9 = vector.broadcast %cst_4 : f32 to vector<32x128xf32>
    %10 = arith.mulf %8, %9 : vector<32x128xf32>
    %11 = arith.subf %1, %10 : vector<32x128xf32>
    %12 = arith.mulf %11, %11 : vector<32x128xf32>
    %13 = arith.truncf %12 : vector<32x128xf32> to vector<32x128xbf16>
    %14 = arith.extf %13 : vector<32x128xbf16> to vector<32x128xf32>
    %15 = arith.subf %12, %14 : vector<32x128xf32>
    %16 = arith.truncf %15 : vector<32x128xf32> to vector<32x128xbf16>
    %cst_5 = arith.constant dense<0.000000e+00> : vector<32x128xf32>
    %17 = tpu.matmul %13, %0, %cst_5 {dimension_numbers = #tpu.dot_dimension_numbers<[1], [0], [0], [1], [0, 0, 1, 1], [], []>} : vector<32x128xbf16>, vector<128x128xbf16>, vector<32x128xf32> -> vector<32x128xf32>
    %cst_6 = arith.constant dense<0.000000e+00> : vector<32x128xf32>
    %18 = tpu.matmul %16, %0, %cst_6 {dimension_numbers = #tpu.dot_dimension_numbers<[1], [0], [0], [1], [0, 0, 1, 1], [], []>} : vector<32x128xbf16>, vector<128x128xbf16>, vector<32x128xf32> -> vector<32x128xf32>
    %19 = arith.addf %17, %18 : vector<32x128xf32>
    %cst_7 = arith.constant 3.125000e-02 : f32
    %20 = vector.broadcast %cst_7 : f32 to vector<32x128xf32>
    %21 = arith.mulf %19, %20 : vector<32x128xf32>
    %cst_8 = arith.constant 9.99999974E-6 : f32
    %22 = vector.broadcast %cst_8 : f32 to vector<32x128xf32>
    %23 = arith.addf %21, %22 : vector<32x128xf32>
    %24 = math.rsqrt %23 : vector<32x128xf32>
    %25 = arith.mulf %11, %24 : vector<32x128xf32>
    %c0_9 = arith.constant 0 : index
    %c0_10 = arith.constant 0 : index
    %26 = vector.load %arg2[%c0_9, %c0_10] : memref<1x128xf32, #tpu.memory_space<vmem>>, vector<1x128xf32>
    %27 = vector.broadcast %26 : vector<1x128xf32> to vector<32x128xf32>
    %28 = arith.mulf %25, %27 : vector<32x128xf32>
    %c0_11 = arith.constant 0 : index
    %c0_12 = arith.constant 0 : index
    %29 = vector.load %arg3[%c0_11, %c0_12] : memref<1x128xf32, #tpu.memory_space<vmem>>, vector<1x128xf32>
    %30 = vector.broadcast %29 : vector<1x128xf32> to vector<32x128xf32>
    %31 = arith.addf %28, %30 : vector<32x128xf32>
    %c0_13 = arith.constant 0 : index
    %c0_14 = arith.constant 0 : index
    %32 = vector.load %arg5[%c0_13, %c0_14] : memref<32x128xf32, #tpu.memory_space<vmem>>, vector<32x128xf32>
    tpu.vector_store %arg5[%c0_13, %c0_14], %31 {strides = array<i32>} : memref<32x128xf32, #tpu.memory_space<vmem>>, vector<32x128xf32>,
    return
  }
  func.func @transform_0(%arg0: i32) -> (i32, i32) {
    %c0_i32 = arith.constant 0 : i32
    %c0_i32_0 = arith.constant 0 : i32
    return %arg0, %c0_i32 : i32, i32
  }
  func.func @transform_1(%arg0: i32) -> (i32, i32) {
    %c0_i32 = arith.constant 0 : i32
    %c0_i32_0 = arith.constant 0 : i32
    %c0_i32_1 = arith.constant 0 : i32
    return %c0_i32, %c0_i32_0 : i32, i32
  }
  func.func @transform_2(%arg0: i32) -> (i32, i32) {
    %c0_i32 = arith.constant 0 : i32
    %c0_i32_0 = arith.constant 0 : i32
    %c0_i32_1 = arith.constant 0 : i32
    return %c0_i32, %c0_i32_0 : i32, i32
  }
  func.func @transform_3(%arg0: i32) -> (i32, i32) {
    %c0_i32 = arith.constant 0 : i32
    %c0_i32_0 = arith.constant 0 : i32
    %c0_i32_1 = arith.constant 0 : i32
    return %c0_i32, %c0_i32_0 : i32, i32
  }
  func.func @transform_4(%arg0: i32) -> (i32, i32) {
    %c0_i32 = arith.constant 0 : i32
    %c0_i32_0 = arith.constant 0 : i32
    return %arg0, %c0_i32 : i32, i32
  }
}

</mosaic_0001>

<bundles_post_ra>
// kernel: tpu_custom_call.1
= control target key start
LH: loop header
LB: loop body
LE: loop exit
PB: predicated region body
PF: predicated region fallthrough
CT: control target
= control target key end

     0   :  { %9 = vsyncpa [#allocation3], 0  ;;  %s1375_s0 = inlined_call_operand.hbm [shape: f32[128,128], index: 0, kind: input, shape index: {}]   ;;  %s1376_s1 = inlined_call_operand.vmem [shape: f32[1,128], index: 1, kind: input, shape index: {}]   ;;  %s1377_s2 = inlined_call_operand.vmem [shape: f32[1,128], index: 2, kind: input, shape index: {}]   ;;  %s1378_s3 = inlined_call_operand.hbm [shape: bf16[128,128], index: 3, kind: input, shape index: {}]   ;;  %s1379_s4 = inlined_call_operand.hbm [shape: f32[128,128], index: 4, kind: output, shape index: {}]  }
   0x1   :  { %11 = vsyncpa [#allocation3 + $0x1], 0 }
   0x2   :  { %12 = vsyncpa [#allocation6], 0 }
   0x3   :  { %13 = vsyncpa [#allocation4], 0 }
   0x4   :  { %15 = vsyncpa [#allocation4 + $0x1], 0  ;;  %s1072_s15 = smov 0   ;;  %s1074_s16 = smov 0  }
   0x5   :  { %s1076_s17 = smov 0   ;;  %s1078_s18 = smov 0  }
   0x6 LB: > { %s1093_s19 = sadd.s32 4294967295, %s1036_s18   ;;  %s673_s20 = sadd.s32 4294967294, %s1036_s18   ;;  %s1036_s18 = sphi %s1078_s18, %s1398_s18   ;;  %s1032_s17 = sphi %s1076_s17, %s1397_s17   ;;  %s1028_s16 = sphi %s1074_s16, %s1396_s16   ;;  %s1024_s15 = sphi %s1072_s15, %s1395_s15  }
   0x7   : > { %p41_p0 = scmp.ne.s32.totalorder %s1028_s16, %s1024_s15  ;;  %p1380_p1 = scmp.eq.s32.totalorder %s1093_s19, 0 }
   0x8   : > { %p134_p3 = scmp.eq.s32.totalorder %s673_s20, 3  ;;  %p674_p5 = scmp.ge.s32.totalorder %s1036_s18, 1 }
   0x9   : > { %p1102_p4 = por %p1380_p1, %p41_p0  ;;  %p141_p7 = scmp.lt.s32.totalorder %s1036_s18, 5 }
   0xa   : > { %p1107_p6 = por %p134_p3, %p41_p0  ;;  %s1038_s24 = smov [#allocation5]  }
   0xb   : > { %s1383_s21 = scalar_select %p1102_p4, 1, 0 }
   0xc   : > { %s1384_s22 = scalar_select %p1107_p6, 1, 0 }
   0xd   : > { %p1112_p8 = pnand %p674_p5, %p141_p7  ;;  %s159_s25 = sshll.u32 %s1038_s24, 4  ;;  %s160_s25 = int_to_ptr.vmem [resolvable:$true] %s159_s25 }
   0xe   : > { %s1125_s27 = sadd.s32 1, %s1036_s18   ;;  %s28_s28 = sadd.s32 1, %s1032_s17 }
   0xf   : > { %s1385_s23 = scalar_select %p1112_p8, 1, 0 }
  0x10   : > { %p837_p9 = pneg %p1112_p8  ;;  %s25_s29 = ssub.s32 %s1036_s18, %s1125_s27 }
  0x11   : > { %s908_s6 = scalar_lea.hbm %s1378_s3, 1024 }
  0x12   : > { %p1120_p10 = pnand %p837_p9, %p1380_p1  ;;  %p909_p11 = scmp.ne.s32.totalorder %s1378_s3, %s908_s6 }
  0x13   : > { %p915_p3 = scmp.lt.u32.totalorder %s908_s6, %s1378_s3 }
  0x14   : > { %p910_p12 = pneg %p1120_p10 }
  0x16   : > { %p911_p13 = pnand %p910_p12, %p909_p11 }
  0x18   : > { %p912_p0 = pneg %p911_p13 }
  0x1a   : > { %p917_p5 = pnand %p915_p3, %p912_p0 }
  0x1c   : > { %920 = shalt.err (!%p917_p5)
}
  0x1d   : > { %s921_s11 = scalar_lea.vmem %s160_s25, 1024  ;;  %p929_p2 = scmp.lt.s32.totalorder %s160_s25, %s160_s25 }
  0x1e   : > { %p922_p7 = scmp.ne.s32.totalorder %s160_s25, %s921_s11  ;;  %p930_p6 = scmp.lt.s32.totalorder %s921_s11, %s921_s11 }
  0x20   : > { %p924_p9 = pnand %p922_p7, %p910_p12  ;;  %p931_p4 = por %p930_p6, %p929_p2 }
  0x22   : > { %p925_p1 = pneg %p924_p9 }
  0x24   : > { %p932_p8 = pnand %p931_p4, %p925_p1 }
  0x26   : > { %935 = shalt.err (!%p932_p8)
}
  0x27   : > { %s1039_s12 = smov 64   ;;  %s1040_s13 = smov 4  }
  0x28   : > { %840 = dma.hbm_to_vmem [thread:$0]  (!%p1120_p10), %s1378_s3, 1024, %s160_s25, [#allocation6], %s1039_s12, %s1039_s12, %s1040_s13  }
  0x29   : > { %p26_p11 = scmp.eq.s32.totalorder %s25_s29, 0  ;;  %p35_p2 = scmp.ne.s32.totalorder %s1032_s17, %s1028_s16 }
  0x2a   : > { %p36_p1 = scmp.eq.s32.totalorder %s1036_s18, 0  ;;  %p850_p4 = scmp.lt.s32.totalorder %s1036_s18, 4 }
  0x2b   : > { %s1151_s24 = scalar_select %p26_p11, %s1032_s17, %s28_s28  }
  0x2c   : > { %p37_p6 = por %p36_p1, %p35_p2  ;;  %p1387_p8 = scmp.eq.s32.totalorder %s1093_s19, 3 }
  0x2d   : > { %s173_s5 = sand.u32 1, %s1032_s17   ;;  %s699_s6 = sshll.u32 %s1036_s18, 9 }
  0x2e   : > { %p1155_p12 = por %p1387_p8, %p35_p2  ;;  %s677_s7 = sshll.u32 %s173_s5, 5 }
  0x2f   : > { %s1164_s9 = scalar_lea.hbm %s1375_s0, %s699_s6  ;;  %s177_s25 = scalar_lea.vmem [#allocation2], %s677_s7 }
  0x30   : > { %s184_s28 = sshll.u32 %s177_s25, 4  ;;  %p1166_p10 = pnand %p850_p4, %p37_p6  ;;  %s1170_s28 = int_to_ptr.vmem [resolvable:$true] %s184_s28 }
  0x31   : > { %s1172_s10 = scalar_lea.sflag [#allocation3], %s173_s5  ;;  %s936_s11 = scalar_lea.hbm %s1164_s9, 512 }
  0x32   : > { %p937_p13 = scmp.ne.s32.totalorder %s1164_s9, %s936_s11  ;;  %p938_p0 = pneg %p1166_p10 }
  0x33   : > { %s941_s14 = scalar_lea.hbm %s1375_s0, 2048  ;;  %p942_p7 = scmp.lt.u32.totalorder %s1164_s9, %s1375_s0 }
  0x34   : > { %p939_p3 = pnand %p938_p0, %p937_p13  ;;  %p943_p9 = scmp.lt.u32.totalorder %s941_s14, %s936_s11 }
  0x35   : > { %p945_p2 = scmp.lt.u32.totalorder %s936_s11, %s1164_s9 }
  0x36   : > { %p940_p5 = pneg %p939_p3  ;;  %p944_p11 = por %p943_p9, %p942_p7 }
  0x38   : > { %p946_p1 = por %p945_p2, %p944_p11 }
  0x3a   : > { %p947_p4 = pnand %p946_p1, %p940_p5 }
  0x3c   : > { %950 = shalt.err (!%p947_p4)
}
  0x3d   : > { %s951_s5 = scalar_lea.vmem %s1170_s28, 512  ;;  %s1041_s7 = smov [#allocation2]  }
  0x3e   : > { %p952_p6 = scmp.ne.s32.totalorder %s1170_s28, %s951_s5  ;;  %s956_s26 = sshll.u32 %s1041_s7, 4  ;;  %s957_s26 = int_to_ptr.vmem [resolvable:$false] %s956_s26 }
  0x3f   : > { %s958_s8 = scalar_lea.vmem %s957_s26, 1024  ;;  %p959_p3 = scmp.lt.s32.totalorder %s1170_s28, %s957_s26 }
  0x40   : > { %p954_p8 = pnand %p952_p6, %p938_p0  ;;  %p960_p7 = scmp.lt.s32.totalorder %s958_s8, %s951_s5 }
  0x42   : > { %p955_p13 = pneg %p954_p8  ;;  %p961_p9 = por %p960_p7, %p959_p3 }
  0x44   : > { %p962_p11 = pnand %p961_p9, %p955_p13 }
  0x46   : > { %965 = shalt.err (!%p962_p11)
}
  0x47   : > { %s1042_s25 = smov 128   ;;  %s1043_s11 = smov 8  }
  0x48   : > { %844 = dma.hbm_to_vmem [thread:$0]  (!%p1166_p10), %s1164_s9, 512, %s1170_s28, %s1172_s10, %s1042_s25, %s1042_s25, %s1043_s11  }
  0x49   : > { %p1390_p0 = scmp.ne.s32.totalorder %s1385_s23, 0 }
  0x4a   : > { %s1203_s12 = sand.u32 (!%p1390_p0), 1, %s1028_s16   ;;  %p1391_p5 = scmp.ne.s32.totalorder (!%p1390_p0), %s1383_s21, 0 }
  0x4b   : > { %196 = sbr.rel (%p1390_p0) target bundleno = 664 (0x298), region = 36  ;;  %s681_s13 = sshll.u32 (!%p1390_p0), %s1203_s12, 5 }
  0x4c   : > { %s199_s14 = scalar_lea.sflag (!%p1390_p0), [#allocation3], %s1203_s12  ;;  %s1209_s20 = scalar_lea.vmem (!%p1390_p0), [#allocation2], %s681_s13 }
  0x52   : > { %1011 = dma.done.wait (%p1391_p5), %s199_s14, 512  }
  0x53   : > { %1013 = vsyncadd (%p1391_p5), %s199_s14, 4294966784  ;;  %p1392_p10 = scmp.eq.s32.totalorder %s1093_s19, 0 }
  0x55   : > { %1015 = dma.done.wait (%p1392_p10), [#allocation6], 1024   ;;  %p1393_p2 = pmov %p1392_p10 }
  0x56   : > { %v1219_v0 = vld [vmem:[#allocation5] sm:$0xff]   ;;  %v1221_v1 = vld [vmem:[#allocation5 + $0x8] sm:$0xff]   ;;  %v1228_v2 = vld [vmem:[#allocation5 + $0x10] sm:$0xff]   ;;  %s700_s29 = sshll.u32 %s1093_s19, 9  ;;  %s230_s10 = scalar_lea.vmem [#allocation7], %s681_s13 }
  0x57   : > { %1017 = vsyncadd (%p1393_p2), [#allocation6], 4294966272  ;;  %741 = vmatprep.subr.bf16.mxu0 %v1219_v0  ;;  %781 = vmatprep.subr.bf16.mxu1 %v1219_v0  ;;  %v1234_v3 = vld [vmem:[#allocation5 + $0x18] sm:$0xff]   ;;  %v1237_v4 = vld [vmem:[%s1209_s20] sm:$0xff]  ;;  %s590_s6 = sshll.u32 %s230_s10, 4  ;;  %s1330_s26 = scalar_lea.hbm %s1379_s4, %s700_s29  ;;  %s1332_s6 = int_to_ptr.vmem [resolvable:$true] %s590_s6 }
  0x58   : > { %742 = vmatpush3.bf16.msra.mxu0 %v1219_v0  ;;  %782 = vmatpush3.bf16.msra.mxu1 %v1219_v0  ;;  %v1240_v5 = vld [vmem:[%s1209_s20 + $0x8] sm:$0xff]  ;;  %v1248_v9 = vld [vmem:[#allocation5 + $0x20] sm:$0xff]   ;;  %v252_v13 = vld [vmem:[%s1209_s20 + $0x10] sm:$0xff]  ;;  %s577_s19 = scalar_lea.sflag [#allocation4], %s1203_s12  ;;  %s966_s8 = scalar_lea.vmem %s1332_s6, 512 }
  0x59   : > { %743 = vmatprep.subr.bf16.mxu0 %v1221_v1  ;;  %783 = vmatprep.subr.bf16.mxu1 %v1221_v1  ;;  %v254_v6 = vpack.c.bf16 %v1240_v5, %v1237_v4  ;;  %v253_v14 = vld [vmem:[%s1209_s20 + $0x18] sm:$0xff]  ;;  %v1258_v15 = vld [vmem:[#allocation5 + $0x28] sm:$0xff]   ;;  %v1264_v17 = vld [vmem:[#allocation5 + $0x30] sm:$0xff]   ;;  %p967_p1 = scmp.ne.s32.totalorder %s1332_s6, %s966_s8  ;;  %s1044_s25 = smov [#allocation7]  }
  0x5a   : > { %v255_v16 = vpack.c.bf16 %v253_v14, %v252_v13  ;;  %v1270_v20 = vld [vmem:[#allocation5 + $0x38] sm:$0xff]   ;;  %s970_s11 = sshll.u32 %s1044_s25, 4  ;;  %s971_s11 = int_to_ptr.vmem [resolvable:$false] %s970_s11 }
  0x5b   : > { %v256_v7 = vunpack.c.l.bf16 %v254_v6  ;;  %v257_v8 = vunpack.c.h.bf16 %v254_v6  ;;  %p968_p4 = pnand %p967_p1, %p1155_p12  ;;  %s972_s13 = scalar_lea.vmem %s971_s11, 1024 }
  0x5c   : > { %744 = vmatpush3.bf16.msra.mxu0 %v1221_v1  ;;  %784 = vmatpush3.bf16.msra.mxu1 %v1221_v1  ;;  %v258_v18 = vunpack.c.l.bf16 %v255_v16  ;;  %v259_v19 = vunpack.c.h.bf16 %v255_v16  ;;  %p973_p8 = scmp.lt.s32.totalorder %s1332_s6, %s971_s11  ;;  %p974_p13 = scmp.lt.s32.totalorder %s972_s13, %s966_s8 }
  0x5d   : > { %745 = vmatprep.subr.bf16.mxu0 %v1228_v2  ;;  %785 = vmatprep.subr.bf16.mxu1 %v1228_v2  ;;  %v260_v10 = vsub.f32 %v1237_v4, %v256_v7  ;;  %v261_v11 = vsub.f32 %v1240_v5, %v257_v8  ;;  %p969_p6 = pneg %p968_p4 }
  0x5e   : > { %v262_v21 = vsub.f32 %v252_v13, %v258_v18  ;;  %v263_v22 = vsub.f32 %v253_v14, %v259_v19  ;;  %p975_p3 = por %p974_p13, %p973_p8 }
  0x5f   : > { %v264_v12 = vpack.c.bf16 %v261_v11, %v260_v10 }
  0x60   : > { %746 = vmatpush3.bf16.msra.mxu0 %v1228_v2  ;;  %786 = vmatpush3.bf16.msra.mxu1 %v1228_v2  ;;  %v265_v23 = vpack.c.bf16 %v263_v22, %v262_v21  ;;  %p976_p7 = pnand %p975_p3, %p969_p6 }
  0x61   : > { %747 = vmatprep.subr.bf16.mxu0 %v1234_v3  ;;  %787 = vmatprep.subr.bf16.mxu1 %v1234_v3 }
  0x62   : > { %757 = vmatprep.mubr.bf16.mxu0 %v264_v12 }
  0x64   : > { %748 = vmatpush3.bf16.msra.mxu0 %v1234_v3  ;;  %788 = vmatpush3.bf16.msra.mxu1 %v1234_v3 }
  0x65   : > { %749 = vmatprep.subr.bf16.mxu0 %v1248_v9  ;;  %789 = vmatprep.subr.bf16.mxu1 %v1248_v9 }
  0x68   : > { %750 = vmatpush3.bf16.msra.mxu0 %v1248_v9  ;;  %790 = vmatpush3.bf16.msra.mxu1 %v1248_v9 }
  0x69   : > { %751 = vmatprep.subr.bf16.mxu0 %v1258_v15  ;;  %791 = vmatprep.subr.bf16.mxu1 %v1258_v15 }
  0x6c   : > { %752 = vmatpush3.bf16.msra.mxu0 %v1258_v15  ;;  %792 = vmatpush3.bf16.msra.mxu1 %v1258_v15 }
  0x6d   : > { %753 = vmatprep.subr.bf16.mxu0 %v1264_v17  ;;  %793 = vmatprep.subr.bf16.mxu1 %v1264_v17 }
  0x70   : > { %754 = vmatpush3.bf16.msra.mxu0 %v1264_v17  ;;  %794 = vmatpush3.bf16.msra.mxu1 %v1264_v17 }
  0x71   : > { %755 = vmatprep.subr.bf16.mxu0 %v1270_v20  ;;  %795 = vmatprep.subr.bf16.mxu1 %v1270_v20 }
  0x74   : > { %756 = vmatpush3.bf16.msra.mxu0 %v1270_v20  ;;  %796 = vmatpush3.bf16.msra.mxu1 %v1270_v20 }
  0x75   : > { %761 = vmatprep.subr.bf16.mxu0 %v1219_v0  ;;  %801 = vmatprep.subr.bf16.mxu1 %v1219_v0 }
  0x77   : > { %758 = vmatmul.mubr.bf16.vlgmr.msra.gmra.mrb[0].mxu0 %v265_v23 }
  0x78   : > { %762 = vmatpush3.bf16.msra.mxu0 %v1219_v0  ;;  %777 = vmatprep.mubr.bf16.mxu0 %v254_v6 }
  0x79   : > { %763 = vmatprep.subr.bf16.mxu0 %v1221_v1 }
  0x7c   : > { %764 = vmatpush3.bf16.msra.mxu0 %v1221_v1 }
  0x7d   : > { %765 = vmatprep.subr.bf16.mxu0 %v1228_v2 }
  0x80   : > { %766 = vmatpush3.bf16.msra.mxu0 %v1228_v2 }
  0x81   : > { %767 = vmatprep.subr.bf16.mxu0 %v1234_v3 }
  0x84   : > { %768 = vmatpush3.bf16.msra.mxu0 %v1234_v3 }
  0x85   : > { %769 = vmatprep.subr.bf16.mxu0 %v1248_v9 }
  0x88   : > { %770 = vmatpush3.bf16.msra.mxu0 %v1248_v9 }
  0x89   : > { %771 = vmatprep.subr.bf16.mxu0 %v1258_v15 }
  0x8c   : > { %772 = vmatpush3.bf16.msra.mxu0 %v1258_v15 }
  0x8d   : > { %773 = vmatprep.subr.bf16.mxu0 %v1264_v17 }
  0x90   : > { %774 = vmatpush3.bf16.msra.mxu0 %v1264_v17 }
  0x91   : > { %775 = vmatprep.subr.bf16.mxu0 %v1270_v20 }
  0x94   : > { %776 = vmatpush3.bf16.msra.mxu0 %v1270_v20 }
  0x97   : > { %778 = vmatmul.mubr.bf16.vlgmr.msra.gmra.mrb[0].mxu0 %v255_v16 }
 0x16a   : > { %v779_v24 = vpop.f32.mrb[0].mxu0 }
 0x16b   : > { %v414_v25 = vmul.f32 0.03125, %v779_v24  ;;  %v397_v26 = vpop.f32.mrb[1].mxu0 }
 0x16c   : > { %v412_v27 = vmul.f32 0.03125, %v397_v26  ;;  %v780_v28 = vpop.f32.mrb[2].mxu0 }
 0x16d   : > { %v418_v29 = vsub.f32 %v252_v13, %v414_v25  ;;  %v415_v30 = vmul.f32 0.03125, %v780_v28  ;;  %v400_v31 = vpop.f32.mrb[3].mxu0 }
 0x16e   : > { %v416_v32 = vsub.f32 %v1237_v4, %v412_v27  ;;  %v413_v33 = vmul.f32 0.03125, %v400_v31 }
 0x16f   : > { %v419_v34 = vsub.f32 %v253_v14, %v415_v30  ;;  %v422_v36 = vmul.f32 %v418_v29, %v418_v29 }
 0x170   : > { %v1298_v35 = vsub.f32 %v1240_v5, %v413_v33  ;;  %v420_v39 = vmul.f32 %v416_v32, %v416_v32  ;;  %v693_v5 = vld [vmem:[%s1377_s2] ss:$0 sm:$0xff] }
 0x171   : > { %v423_v37 = vmul.f32 %v419_v34, %v419_v34 }
 0x172   : > { %v421_v38 = vmul.f32 %v1298_v35, %v1298_v35 }
 0x173   : > { %v425_v40 = vpack.c.bf16 %v423_v37, %v422_v36 }
 0x174   : > { %v424_v41 = vpack.c.bf16 %v421_v38, %v420_v39 }
 0x175   : > { %v428_v42 = vunpack.c.l.bf16 %v425_v40  ;;  %v429_v43 = vunpack.c.h.bf16 %v425_v40 }
 0x176   : > { %v426_v44 = vunpack.c.l.bf16 %v424_v41  ;;  %v427_v45 = vunpack.c.h.bf16 %v424_v41 }
 0x177   : > { %v432_v46 = vsub.f32 %v422_v36, %v428_v42  ;;  %v433_v47 = vsub.f32 %v423_v37, %v429_v43 }
 0x178   : > { %v430_v48 = vsub.f32 %v420_v39, %v426_v44  ;;  %v431_v49 = vsub.f32 %v421_v38, %v427_v45 }
 0x179   : > { %v435_v51 = vpack.c.bf16 %v433_v47, %v432_v46 }
 0x17a   : > { %v434_v50 = vpack.c.bf16 %v431_v49, %v430_v48 }
 0x17c   : > { %797 = vmatprep.mubr.bf16.mxu1 %v434_v50 }
 0x17d   : > { %798 = vmatmul.mubr.bf16.vlgmr.msra.gmra.mrb[0].mxu1 %v435_v51 }
 0x17e   : > { %802 = vmatpush3.bf16.msra.mxu1 %v1219_v0  ;;  %817 = vmatprep.mubr.bf16.mxu1 %v424_v41 }
 0x17f   : > { %803 = vmatprep.subr.bf16.mxu1 %v1221_v1 }
 0x182   : > { %804 = vmatpush3.bf16.msra.mxu1 %v1221_v1  ;;  %v692_v1 = vld [vmem:[%s1376_s1] ss:$0 sm:$0xff] }
 0x183   : > { %805 = vmatprep.subr.bf16.mxu1 %v1228_v2 }
 0x186   : > { %806 = vmatpush3.bf16.msra.mxu1 %v1228_v2 }
 0x187   : > { %807 = vmatprep.subr.bf16.mxu1 %v1234_v3 }
 0x18a   : > { %808 = vmatpush3.bf16.msra.mxu1 %v1234_v3 }
 0x18b   : > { %809 = vmatprep.subr.bf16.mxu1 %v1248_v9 }
 0x18e   : > { %810 = vmatpush3.bf16.msra.mxu1 %v1248_v9 }
 0x18f   : > { %811 = vmatprep.subr.bf16.mxu1 %v1258_v15 }
 0x192   : > { %812 = vmatpush3.bf16.msra.mxu1 %v1258_v15 }
 0x193   : > { %813 = vmatprep.subr.bf16.mxu1 %v1264_v17 }
 0x196   : > { %814 = vmatpush3.bf16.msra.mxu1 %v1264_v17 }
 0x197   : > { %815 = vmatprep.subr.bf16.mxu1 %v1270_v20 }
 0x19a   : > { %816 = vmatpush3.bf16.msra.mxu1 %v1270_v20 }
 0x19d   : > { %818 = vmatmul.mubr.bf16.vlgmr.msra.gmra.mrb[0].mxu1 %v425_v40 }
 0x270   : > { %v819_v52 = vpop.f32.mrb[0].mxu1 }
 0x271   : > { %v536_v53 = vmul.f32 0.03125, %v819_v52  ;;  %v519_v54 = vpop.f32.mrb[1].mxu1 }
 0x272   : > { %v534_v55 = vmul.f32 0.03125, %v519_v54  ;;  %v820_v56 = vpop.f32.mrb[2].mxu1 }
 0x273   : > { %v540_v57 = vadd.f32 1e-05, %v536_v53  ;;  %v537_v58 = vmul.f32 0.03125, %v820_v56  ;;  %v522_v59 = vpop.f32.mrb[3].mxu1 }
 0x274   : > { %v538_v60 = vadd.f32 1e-05, %v534_v55  ;;  %v535_v61 = vmul.f32 0.03125, %v522_v59 }
 0x275   : > { %900 = vrsqrt.f32 %v540_v57  ;;  %v541_v62 = vadd.f32 1e-05, %v537_v58 }
 0x276   : > { %902 = vrsqrt.f32 %v538_v60  ;;  %v539_v63 = vadd.f32 1e-05, %v535_v61 }
 0x277   : > { %904 = vrsqrt.f32 %v541_v62 }
 0x278   : > { %906 = vrsqrt.f32 %v539_v63 }
 0x27f   : > { %v901_v0 = vpop.eup %900 }
 0x280   : > { %v903_v2 = vpop.eup %902  ;;  %v548_v3 = vmul.f32 %v901_v0, %v418_v29 }
 0x281   : > { %v905_v4 = vpop.eup %904  ;;  %v546_v6 = vmul.f32 %v903_v2, %v416_v32 }
 0x282   : > { %v907_v7 = vpop.eup %906  ;;  %v559_v8 = vmul.f32 %v692_v1, %v548_v3  ;;  %v549_v9 = vmul.f32 %v905_v4, %v419_v34 }
 0x283   : > { %v557_v10 = vmul.f32 %v692_v1, %v546_v6  ;;  %v547_v11 = vmul.f32 %v907_v7, %v1298_v35 }
 0x284   : > { %v570_v12 = vadd.f32 %v693_v5, %v559_v8  ;;  %v560_v13 = vmul.f32 %v692_v1, %v549_v9 }
 0x285   : > { %v568_v14 = vadd.f32 %v693_v5, %v557_v10  ;;  %v558_v15 = vmul.f32 %v692_v1, %v547_v11 }
 0x286   : > { %574 = vst [vmem:[%s230_s10 + $0x10] sm:$0xff] %v570_v12  ;;  %v571_v16 = vadd.f32 %v693_v5, %v560_v13 }
 0x287   : > { %572 = vst [vmem:[%s230_s10] sm:$0xff] %v568_v14  ;;  %v569_v17 = vadd.f32 %v693_v5, %v558_v15 }
 0x288   : > { %575 = vst [vmem:[%s230_s10 + $0x18] sm:$0xff] %v571_v16 }
 0x289   : > { %573 = vst [vmem:[%s230_s10 + $0x8] sm:$0xff] %v569_v17 }
 0x28a   : > { %979 = shalt.err (!%p976_p7)
}
 0x28b   : > { %s980_s14 = scalar_lea.hbm %s1330_s26, 512  ;;  %s984_s23 = scalar_lea.hbm %s1379_s4, 2048 }
 0x28c   : > { %p981_p9 = scmp.ne.s32.totalorder %s1330_s26, %s980_s14  ;;  %p985_p5 = scmp.lt.u32.totalorder %s1330_s26, %s1379_s4 }
 0x28d   : > { %p986_p10 = scmp.lt.u32.totalorder %s984_s23, %s980_s14  ;;  %p988_p1 = scmp.lt.u32.totalorder %s980_s14, %s1330_s26 }
 0x28e   : > { %p982_p11 = pnand %p981_p9, %p1155_p12 }
 0x28f   : > { %p987_p2 = por %p986_p10, %p985_p5 }
 0x290   : > { %p983_p0 = pneg %p982_p11 }
 0x291   : > { %p989_p4 = por %p988_p1, %p987_p2 }
 0x293   : > { %p990_p6 = pnand %p989_p4, %p983_p0 }
 0x295   : > { %993 = shalt.err (!%p990_p6)
}
 0x296   : > { %s1045_s29 = smov 128   ;;  %s1046_s10 = smov 8  }
 0x297   : > { %835 = dma.vmem_to_hbm [thread:$0]  (%p1155_p12), %s1332_s6, 512, %s1330_s26, %s577_s19, %s1045_s29, %s1045_s29, %s1046_s10  }
 0x298 PF: > { %p852_p8 = scmp.ge.s32.totalorder %s1036_s18, 2  ;;  %s605_s5 = sand.u32 1, %s1024_s15  }
 0x299   : > { %p1394_p13 = scmp.ne.s32.totalorder %s1384_s22, 0  ;;  %s606_s7 = scalar_lea.sflag [#allocation4], %s605_s5 }
 0x29b   : > { %p846_p3 = pnand %p852_p8, %p1394_p13 }
 0x29d   : > { %1019 = dma.done.wait (!%p846_p3), %s606_s7, 512  }
 0x29e   : > { %1021 = vsyncadd (!%p846_p3), %s606_s7, 4294966784  ;;  %p18_p7 = scmp.ge.s32.totalorder %s1125_s27, 6   ;;  %s1395_s15 = smov %s1028_s16 }
 0x29f   : > { %s1396_s16 = smov %s1032_s17  ;;  %s1397_s17 = smov %s1151_s24 }
 0x2a0   : > { %s1398_s18 = smov %s1125_s27  ;;  %20 = sbr.rel (!%p18_p7) target bundleno = 6 (0x6), region = 85 }
 0x2a7   :  { %611 = vsyncpa [#allocation3], 1 }
 0x2a8   :  { %613 = vsyncpa [#allocation3 + $0x1], 1 }
 0x2a9   :  { %614 = vsyncpa [#allocation6], 1 }
 0x2aa   :  { %615 = vsyncpa [#allocation4], 1 }
 0x2ab   :  { %617 = vsyncpa [#allocation4 + $0x1], 1 }

</bundles_post_ra>
